<compile_context>
chip_gen: v7x
topology: tpu7x:2x2x1
jax: 0.10.0
libtpu: 0.0.40
codegen_flags: <defaults>
</compile_context>

<pallas_src>
import functools

import jax
import jax.numpy as jnp
from jax import lax
from jax.experimental import pallas as pl
from jax.experimental.pallas import tpu as pltpu

HIDDEN_SIZE = 10
N_LAYERS = 7
MIN_TILE_B = 256    # multiple of 128 (v5e lanes) and 256 (v6e/v7x MXU)
MAX_TILE_B = 4096   # per-step working set ~4.5 MiB << 32 MiB scoped VMEM default


def _bf16_activations_ok():
    """bf16 VPU/EUP exists on v6e/v7x but not on v5e and older."""
    try:
        kind = jax.devices()[0].device_kind.lower()
    except Exception:
        return False
    return not any(t in kind for t in ("v2", "v3", "v4", "v5"))


def _pick_tile_b(batch):
    if batch <= MIN_TILE_B:
        return MIN_TILE_B
    half = -(-batch // 2)            # aim for >= 2 grid steps (v7x has 2 TCs)
    tile = -(-half // 256) * 256     # round up to a multiple of 256
    return max(MIN_TILE_B, min(MAX_TILE_B, tile))


def _mlp_kernel(x_ref, w_ref, b_ref, out_ref, *, dims, act_dtype):
    """x_ref:  (tile_b, obs) f32 batch-major block straight from HBM.
       w_ref:  (7, OUT_MAX, IN_MAX) bf16 slab (VMEM-resident, constant index_map).
       b_ref:  (7, OUT_MAX, 1)      f32 slab (VMEM-resident, constant index_map).
       out_ref:(1, tile_b) f32 — batch on lanes, lane-dense store."""
    n_layers = len(dims) - 1

    # Layer 1: contract the last axes of w1 (out, in) and x (tile_b, in) so the
    # result is already feature-major (out, tile_b); MXU takes the transposed
    # operand for free — no transpose op anywhere.
    w1 = w_ref[0][: dims[1], : dims[0]]
    x = x_ref[...].astype(jnp.bfloat16)
    z = lax.dot_general(w1, x, (((1,), (1,)), ((), ())),
                        preferred_element_type=jnp.float32)
    z = z + b_ref[0][: dims[1], :]
    h = jnp.tanh(z.astype(act_dtype))

    for li in range(1, n_layers):
        w = w_ref[li][: dims[li + 1], : dims[li]]
        z = jnp.dot(w, h.astype(jnp.bfloat16),
                    preferred_element_type=jnp.float32)
        z = z + b_ref[li][: dims[li + 1], :]
        if li < n_layers - 1:
            h = jnp.tanh(z.astype(act_dtype))   # bf16 tanh on v6e/v7x, f32 on v5e
        else:
            h = jax.nn.sigmoid(z)               # final layer: f32 sigmoid

    out_ref[...] = h                             # (1, tile_b) f32, lane-dense


def net_forward(x, w_slab, b_slab, dims, *, act_dtype=None, tile_b=None):
    """x: (batch, obs) f32.  Returns (batch, 1) f32 sigmoid probabilities."""
    batch, obs = x.shape
    assert obs == dims[0]
    if act_dtype is None:
        act_dtype = jnp.bfloat16 if _bf16_activations_ok() else jnp.float32
    if tile_b is None:
        tile_b = _pick_tile_b(batch)
    grid = (pl.cdiv(batch, tile_b),)   # ragged last block handled by Pallas masking

    kernel = functools.partial(_mlp_kernel, dims=tuple(dims), act_dtype=act_dtype)

    out = pl.pallas_call(
        kernel,
        out_shape=jax.ShapeDtypeStruct((1, batch), jnp.float32),
        grid=grid,
        in_specs=[
            pl.BlockSpec((tile_b, obs), lambda i: (i, 0)),     # batch-major x tile
            pl.BlockSpec(w_slab.shape, lambda i: (0, 0, 0)),   # VMEM-resident slab
            pl.BlockSpec(b_slab.shape, lambda i: (0, 0, 0)),   # VMEM-resident slab
        ],
        out_specs=pl.BlockSpec((1, tile_b), lambda i: (0, i)),
        compiler_params=pltpu.CompilerParams(
            dimension_semantics=("parallel",)),  # 2 TCs on v7x; no-op elsewhere
    )(x, w_slab, b_slab)

    return out.T                                  # (batch, 1); degenerate-dim transpose


def init_params(key, obs_size, hidden_size):
    """Mirror nn.Linear's U(-1/sqrt(fan_in), 1/sqrt(fan_in)) init.
    Returns (flat f32 list [w1, b1, ..., w7, b7], dims); w: (out, in), b: (out, 1)."""
    dims = [obs_size] + [hidden_size] * 6 + [1]
    params = []
    for i in range(N_LAYERS):
        fan_in, fan_out = dims[i], dims[i + 1]
        key, kw, kb = jax.random.split(key, 3)
        bound = 1.0 / float(fan_in) ** 0.5
        w = jax.random.uniform(kw, (fan_out, fan_in), jnp.float32, -bound, bound)
        b = jax.random.uniform(kb, (fan_out, 1), jnp.float32, -bound, bound)
        params += [w, b]
    return params, dims


def pack_params(params_f32, dims):
    """Pack the 14 tiny tensors into one bf16 weight slab and one f32 bias slab
    (statically zero-padded) so the kernel takes 2 inputs instead of 14."""
    out_max = max(dims[1:])
    in_max = max(dims[:-1])
    w_slab = jnp.zeros((N_LAYERS, out_max, in_max), jnp.float32)
    b_slab = jnp.zeros((N_LAYERS, out_max, 1), jnp.float32)
    for i in range(N_LAYERS):
        w, b = params_f32[2 * i], params_f32[2 * i + 1]
        w_slab = w_slab.at[i, : dims[i + 1], : dims[i]].set(w)
        b_slab = b_slab.at[i, : dims[i + 1], :].set(b)
    return w_slab.astype(jnp.bfloat16), b_slab


def reference_forward(x, params_f32, dims, *, match_kernel_dtypes=False,
                      act_dtype=jnp.float32):
    """Pure-JAX batch-major reference.  match_kernel_dtypes=True mirrors the
    kernel's bf16-weight / bf16-dot / act_dtype-tanh numerics."""
    h = x.astype(jnp.float32)
    for li in range(N_LAYERS):
        w, b = params_f32[2 * li], params_f32[2 * li + 1]
        if match_kernel_dtypes:
            z = jnp.dot(h.astype(jnp.bfloat16), w.astype(jnp.bfloat16).T,
                        preferred_element_type=jnp.float32) + b.T
        else:
            z = jnp.dot(h, w.T, preferred_element_type=jnp.float32) + b.T
        if li < N_LAYERS - 1:
            a_dt = act_dtype if match_kernel_dtypes else jnp.float32
            h = jnp.tanh(z.astype(a_dt))
        else:
            h = jax.nn.sigmoid(z)
    return h.astype(jnp.float32)


if __name__ == "__main__":
    key = jax.random.PRNGKey(0)
    key, k_p, k_x, k_x2 = jax.random.split(key, 4)

    obs_size = 4
    params_f32, dims = init_params(k_p, obs_size, HIDDEN_SIZE)
    w_slab, b_slab = pack_params(params_f32, dims)
    act_dtype = jnp.bfloat16 if _bf16_activations_ok() else jnp.float32

    # Small batch: single (ragged) grid step — block (256, 4) over batch 8.
    batch = 8
    x = jax.random.normal(k_x, (batch, obs_size), dtype=jnp.float32)
    out = jax.block_until_ready(
        net_forward(x, w_slab, b_slab, dims, act_dtype=act_dtype))
    assert out.shape == (batch, 1)
    ref_match = reference_forward(x, params_f32, dims,
                                  match_kernel_dtypes=True, act_dtype=act_dtype)
    ref_f32 = reference_forward(x, params_f32, dims)
    assert jnp.allclose(out, ref_match, atol=2e-2, rtol=2e-2), (out, ref_match)
    assert jnp.allclose(out, ref_f32, atol=6e-2, rtol=6e-2), (out, ref_f32)

    # Larger non-multiple batch: 2 grid steps (tile 512) + ragged last block.
    batch2 = 777
    x2 = jax.random.normal(k_x2, (batch2, obs_size), dtype=jnp.float32)
    out2 = jax.block_until_ready(
        net_forward(x2, w_slab, b_slab, dims, act_dtype=act_dtype))
    assert out2.shape == (batch2, 1)
    ref2 = reference_forward(x2, params_f32, dims,
                             match_kernel_dtypes=True, act_dtype=act_dtype)
    assert jnp.allclose(out2, ref2, atol=2e-2, rtol=2e-2)

    # TODO(synk): Net.prob()/Net.action() do host-side numpy conversion and python
    # random sampling — left to the caller, not kernel work.
    print("KERNEL_OK")
</pallas_src>

<mosaic_0001>
module attributes {stable_mosaic.version = 11 : i64} {
  func.func @_mlp_kernel(%arg0: i32, %arg1: memref<256x4xf32, #tpu.memory_space<vmem>>, %arg2: memref<7x10x10xbf16, #tpu.memory_space<vmem>>, %arg3: memref<7x10x1xf32, #tpu.memory_space<vmem>>, %arg4: memref<1x256xf32, #tpu.memory_space<vmem>>) attributes {dimension_semantics = [#tpu.dimension_semantics<parallel>], iteration_bounds = array<i64: 1>, scalar_prefetch = 0 : i64, scratch_operands = 0 : i64, tpu.core_type = #tpu.core_type<tc>, window_params = [{transform_indices = @transform_0, window_bounds = array<i64: 256, 4>}, {pipeline_mode = #tpu.pipeline_mode<synchronous>, transform_indices = @transform_1, window_bounds = array<i64: 7, 10, 10>}, {pipeline_mode = #tpu.pipeline_mode<synchronous>, transform_indices = @transform_2, window_bounds = array<i64: 7, 10, 1>}, {transform_indices = @transform_3, window_bounds = array<i64: 1, 256>}]} {
    %c0 = arith.constant 0 : index
    %c0_0 = arith.constant 0 : index
    %c0_1 = arith.constant 0 : index
    %0 = vector.load %arg2[%c0, %c0_0, %c0_1] : memref<7x10x10xbf16, #tpu.memory_space<vmem>>, vector<1x10x10xbf16>
    %1 = vector.shape_cast %0 : vector<1x10x10xbf16> to vector<10x10xbf16>
    %2 = vector.extract_strided_slice %1 {offsets = [0, 0], sizes = [10, 4], strides = [1, 1]} : vector<10x10xbf16> to vector<10x4xbf16>
    %c0_2 = arith.constant 0 : index
    %c0_3 = arith.constant 0 : index
    %3 = vector.load %arg1[%c0_2, %c0_3] : memref<256x4xf32, #tpu.memory_space<vmem>>, vector<256x4xf32>
    %4 = arith.truncf %3 : vector<256x4xf32> to vector<256x4xbf16>
    %cst = arith.constant dense<0.000000e+00> : vector<10x256xf32>
    %5 = tpu.matmul %2, %4, %cst {dimension_numbers = #tpu.dot_dimension_numbers<[1], [1], [0], [0], [0, 0, 1, 0], [], []>} : vector<10x4xbf16>, vector<256x4xbf16>, vector<10x256xf32> -> vector<10x256xf32>
    %c0_4 = arith.constant 0 : index
    %c0_5 = arith.constant 0 : index
    %c0_6 = arith.constant 0 : index
    %6 = vector.load %arg3[%c0_4, %c0_5, %c0_6] : memref<7x10x1xf32, #tpu.memory_space<vmem>>, vector<1x10x1xf32>
    %7 = vector.shape_cast %6 : vector<1x10x1xf32> to vector<10x1xf32>
    %8 = vector.broadcast %7 : vector<10x1xf32> to vector<10x256xf32>
    %9 = arith.addf %5, %8 : vector<10x256xf32>
    %10 = arith.truncf %9 : vector<10x256xf32> to vector<10x256xbf16>
    %11 = math.tanh %10 : vector<10x256xbf16>
    %c1 = arith.constant 1 : index
    %c0_7 = arith.constant 0 : index
    %c0_8 = arith.constant 0 : index
    %12 = vector.load %arg2[%c1, %c0_7, %c0_8] : memref<7x10x10xbf16, #tpu.memory_space<vmem>>, vector<1x10x10xbf16>
    %13 = vector.shape_cast %12 : vector<1x10x10xbf16> to vector<10x10xbf16>
    %cst_9 = arith.constant dense<0.000000e+00> : vector<10x256xf32>
    %14 = tpu.matmul %13, %11, %cst_9 {dimension_numbers = #tpu.dot_dimension_numbers<[1], [0], [0], [1], [0, 0, 1, 1], [], []>} : vector<10x10xbf16>, vector<10x256xbf16>, vector<10x256xf32> -> vector<10x256xf32>
    %c1_10 = arith.constant 1 : index
    %c0_11 = arith.constant 0 : index
    %c0_12 = arith.constant 0 : index
    %15 = vector.load %arg3[%c1_10, %c0_11, %c0_12] : memref<7x10x1xf32, #tpu.memory_space<vmem>>, vector<1x10x1xf32>
    %16 = vector.shape_cast %15 : vector<1x10x1xf32> to vector<10x1xf32>
    %17 = vector.broadcast %16 : vector<10x1xf32> to vector<10x256xf32>
    %18 = arith.addf %14, %17 : vector<10x256xf32>
    %19 = arith.truncf %18 : vector<10x256xf32> to vector<10x256xbf16>
    %20 = math.tanh %19 : vector<10x256xbf16>
    %c2 = arith.constant 2 : index
    %c0_13 = arith.constant 0 : index
    %c0_14 = arith.constant 0 : index
    %21 = vector.load %arg2[%c2, %c0_13, %c0_14] : memref<7x10x10xbf16, #tpu.memory_space<vmem>>, vector<1x10x10xbf16>
    %22 = vector.shape_cast %21 : vector<1x10x10xbf16> to vector<10x10xbf16>
    %cst_15 = arith.constant dense<0.000000e+00> : vector<10x256xf32>
    %23 = tpu.matmul %22, %20, %cst_15 {dimension_numbers = #tpu.dot_dimension_numbers<[1], [0], [0], [1], [0, 0, 1, 1], [], []>} : vector<10x10xbf16>, vector<10x256xbf16>, vector<10x256xf32> -> vector<10x256xf32>
    %c2_16 = arith.constant 2 : index
    %c0_17 = arith.constant 0 : index
    %c0_18 = arith.constant 0 : index
    %24 = vector.load %arg3[%c2_16, %c0_17, %c0_18] : memref<7x10x1xf32, #tpu.memory_space<vmem>>, vector<1x10x1xf32>
    %25 = vector.shape_cast %24 : vector<1x10x1xf32> to vector<10x1xf32>
    %26 = vector.broadcast %25 : vector<10x1xf32> to vector<10x256xf32>
    %27 = arith.addf %23, %26 : vector<10x256xf32>
    %28 = arith.truncf %27 : vector<10x256xf32> to vector<10x256xbf16>
    %29 = math.tanh %28 : vector<10x256xbf16>
    %c3 = arith.constant 3 : index
    %c0_19 = arith.constant 0 : index
    %c0_20 = arith.constant 0 : index
    %30 = vector.load %arg2[%c3, %c0_19, %c0_20] : memref<7x10x10xbf16, #tpu.memory_space<vmem>>, vector<1x10x10xbf16>
    %31 = vector.shape_cast %30 : vector<1x10x10xbf16> to vector<10x10xbf16>
    %cst_21 = arith.constant dense<0.000000e+00> : vector<10x256xf32>
    %32 = tpu.matmul %31, %29, %cst_21 {dimension_numbers = #tpu.dot_dimension_numbers<[1], [0], [0], [1], [0, 0, 1, 1], [], []>} : vector<10x10xbf16>, vector<10x256xbf16>, vector<10x256xf32> -> vector<10x256xf32>
    %c3_22 = arith.constant 3 : index
    %c0_23 = arith.constant 0 : index
    %c0_24 = arith.constant 0 : index
    %33 = vector.load %arg3[%c3_22, %c0_23, %c0_24] : memref<7x10x1xf32, #tpu.memory_space<vmem>>, vector<1x10x1xf32>
    %34 = vector.shape_cast %33 : vector<1x10x1xf32> to vector<10x1xf32>
    %35 = vector.broadcast %34 : vector<10x1xf32> to vector<10x256xf32>
    %36 = arith.addf %32, %35 : vector<10x256xf32>
    %37 = arith.truncf %36 : vector<10x256xf32> to vector<10x256xbf16>
    %38 = math.tanh %37 : vector<10x256xbf16>
    %c4 = arith.constant 4 : index
    %c0_25 = arith.constant 0 : index
    %c0_26 = arith.constant 0 : index
    %39 = vector.load %arg2[%c4, %c0_25, %c0_26] : memref<7x10x10xbf16, #tpu.memory_space<vmem>>, vector<1x10x10xbf16>
    %40 = vector.shape_cast %39 : vector<1x10x10xbf16> to vector<10x10xbf16>
    %cst_27 = arith.constant dense<0.000000e+00> : vector<10x256xf32>
    %41 = tpu.matmul %40, %38, %cst_27 {dimension_numbers = #tpu.dot_dimension_numbers<[1], [0], [0], [1], [0, 0, 1, 1], [], []>} : vector<10x10xbf16>, vector<10x256xbf16>, vector<10x256xf32> -> vector<10x256xf32>
    %c4_28 = arith.constant 4 : index
    %c0_29 = arith.constant 0 : index
    %c0_30 = arith.constant 0 : index
    %42 = vector.load %arg3[%c4_28, %c0_29, %c0_30] : memref<7x10x1xf32, #tpu.memory_space<vmem>>, vector<1x10x1xf32>
    %43 = vector.shape_cast %42 : vector<1x10x1xf32> to vector<10x1xf32>
    %44 = vector.broadcast %43 : vector<10x1xf32> to vector<10x256xf32>
    %45 = arith.addf %41, %44 : vector<10x256xf32>
    %46 = arith.truncf %45 : vector<10x256xf32> to vector<10x256xbf16>
    %47 = math.tanh %46 : vector<10x256xbf16>
    %c5 = arith.constant 5 : index
    %c0_31 = arith.constant 0 : index
    %c0_32 = arith.constant 0 : index
    %48 = vector.load %arg2[%c5, %c0_31, %c0_32] : memref<7x10x10xbf16, #tpu.memory_space<vmem>>, vector<1x10x10xbf16>
    %49 = vector.shape_cast %48 : vector<1x10x10xbf16> to vector<10x10xbf16>
    %cst_33 = arith.constant dense<0.000000e+00> : vector<10x256xf32>
    %50 = tpu.matmul %49, %47, %cst_33 {dimension_numbers = #tpu.dot_dimension_numbers<[1], [0], [0], [1], [0, 0, 1, 1], [], []>} : vector<10x10xbf16>, vector<10x256xbf16>, vector<10x256xf32> -> vector<10x256xf32>
    %c5_34 = arith.constant 5 : index
    %c0_35 = arith.constant 0 : index
    %c0_36 = arith.constant 0 : index
    %51 = vector.load %arg3[%c5_34, %c0_35, %c0_36] : memref<7x10x1xf32, #tpu.memory_space<vmem>>, vector<1x10x1xf32>
    %52 = vector.shape_cast %51 : vector<1x10x1xf32> to vector<10x1xf32>
    %53 = vector.broadcast %52 : vector<10x1xf32> to vector<10x256xf32>
    %54 = arith.addf %50, %53 : vector<10x256xf32>
    %55 = arith.truncf %54 : vector<10x256xf32> to vector<10x256xbf16>
    %56 = math.tanh %55 : vector<10x256xbf16>
    %c6 = arith.constant 6 : index
    %c0_37 = arith.constant 0 : index
    %c0_38 = arith.constant 0 : index
    %57 = vector.load %arg2[%c6, %c0_37, %c0_38] : memref<7x10x10xbf16, #tpu.memory_space<vmem>>, vector<1x10x10xbf16>
    %58 = vector.shape_cast %57 : vector<1x10x10xbf16> to vector<10x10xbf16>
    %59 = vector.extract_strided_slice %58 {offsets = [0, 0], sizes = [1, 10], strides = [1, 1]} : vector<10x10xbf16> to vector<1x10xbf16>
    %cst_39 = arith.constant dense<0.000000e+00> : vector<1x256xf32>
    %60 = tpu.matmul %59, %56, %cst_39 {dimension_numbers = #tpu.dot_dimension_numbers<[1], [0], [0], [1], [0, 0, 1, 1], [], []>} : vector<1x10xbf16>, vector<10x256xbf16>, vector<1x256xf32> -> vector<1x256xf32>
    %c6_40 = arith.constant 6 : index
    %c0_41 = arith.constant 0 : index
    %c0_42 = arith.constant 0 : index
    %61 = vector.load %arg3[%c6_40, %c0_41, %c0_42] : memref<7x10x1xf32, #tpu.memory_space<vmem>>, vector<1x10x1xf32>
    %62 = vector.shape_cast %61 : vector<1x10x1xf32> to vector<10x1xf32>
    %63 = vector.extract_strided_slice %62 {offsets = [0, 0], sizes = [1, 1], strides = [1, 1]} : vector<10x1xf32> to vector<1x1xf32>
    %64 = vector.broadcast %63 : vector<1x1xf32> to vector<1x256xf32>
    %65 = arith.addf %60, %64 : vector<1x256xf32>
    %66 = arith.negf %65 : vector<1x256xf32>
    %67 = math.exp %66 : vector<1x256xf32>
    %cst_43 = arith.constant 1.000000e+00 : f32
    %68 = vector.broadcast %cst_43 : f32 to vector<1x256xf32>
    %69 = arith.addf %68, %67 : vector<1x256xf32>
    %70 = arith.divf %68, %69 : vector<1x256xf32>
    %c0_44 = arith.constant 0 : index
    %c0_45 = arith.constant 0 : index
    %71 = vector.load %arg4[%c0_44, %c0_45] : memref<1x256xf32, #tpu.memory_space<vmem>>, vector<1x256xf32>
    tpu.vector_store %arg4[%c0_44, %c0_45], %70 {strides = array<i32>} : memref<1x256xf32, #tpu.memory_space<vmem>>, vector<1x256xf32>,
    return
  }
  func.func @transform_0(%arg0: i32) -> (i32, i32) {
    %c0_i32 = arith.constant 0 : i32
    %c0_i32_0 = arith.constant 0 : i32
    return %arg0, %c0_i32 : i32, i32
  }
  func.func @transform_1(%arg0: i32) -> (i32, i32, i32) {
    %c0_i32 = arith.constant 0 : i32
    %c0_i32_0 = arith.constant 0 : i32
    %c0_i32_1 = arith.constant 0 : i32
    %c0_i32_2 = arith.constant 0 : i32
    return %c0_i32, %c0_i32_0, %c0_i32_1 : i32, i32, i32
  }
  func.func @transform_2(%arg0: i32) -> (i32, i32, i32) {
    %c0_i32 = arith.constant 0 : i32
    %c0_i32_0 = arith.constant 0 : i32
    %c0_i32_1 = arith.constant 0 : i32
    %c0_i32_2 = arith.constant 0 : i32
    return %c0_i32, %c0_i32_0, %c0_i32_1 : i32, i32, i32
  }
  func.func @transform_3(%arg0: i32) -> (i32, i32) {
    %c0_i32 = arith.constant 0 : i32
    %c0_i32_0 = arith.constant 0 : i32
    return %c0_i32, %arg0 : i32, i32
  }
}

</mosaic_0001>

<bundles_post_ra>
// kernel: tpu_custom_call.1
= control target key start
LH: loop header
LB: loop body
LE: loop exit
PB: predicated region body
PF: predicated region fallthrough
CT: control target
= control target key end

     0   :  { %8 = vsyncpa [#allocation3], 0  ;;  %vm83_vm0 = vcmask 31744   ;;  %v813_v6 = vmov 0   ;;  %vm207_vm1 = vcmask 1044480   ;;  %vm203_vm2 = vcmask 80896   ;;  %s1052_s0 = inlined_call_operand.vmem [shape: f32[8,4], index: 0, kind: input, shape index: {}]   ;;  %s1053_s1 = inlined_call_operand.vmem [shape: bf16[7,10,10], index: 1, kind: input, shape index: {}]   ;;  %s1054_s2 = inlined_call_operand.vmem [shape: f32[7,10,1], index: 2, kind: input, shape index: {}]   ;;  %s1055_s3 = inlined_call_operand.hbm [shape: f32[1,8], index: 3, kind: output, shape index: {}]  }
   0x1   :  { %v34_v0 = vld [vmem:[%s1052_s0 + $0x80] sm:$0xff]  ;;  %v35_v1 = vld [vmem:[%s1052_s0 + $0x88] sm:$0xff]  ;;  %v36_v5 = vld [vmem:[%s1052_s0 + $0x90] sm:$0xff]  ;;  %749 = vset.pattern.permute.xlu0 %v813_v6  ;;  %246 = vmatprep.mubr.bf16.mxu1 %v813_v6 }
   0x2   :  { %v58_v2 = vpack.c.bf16 %v35_v1, %v34_v0  ;;  %v18_v3 = vld [vmem:[%s1052_s0] sm:$0xff]  ;;  %v19_v4 = vld [vmem:[%s1052_s0 + $0x8] sm:$0xff]  ;;  %v37_v8 = vld [vmem:[%s1052_s0 + $0x98] sm:$0xff]  ;;  %750 = vset.pattern.permute.xlu1 %v813_v6 }
   0x3   :  { %v50_v7 = vpack.c.bf16 %v19_v4, %v18_v3  ;;  %v59_v9 = vpack.c.bf16 %v37_v8, %v36_v5  ;;  %v20_v10 = vld [vmem:[%s1052_s0 + $0x10] sm:$0xff]  ;;  %v21_v11 = vld [vmem:[%s1052_s0 + $0x18] sm:$0xff]  ;;  %v38_v14 = vld [vmem:[%s1052_s0 + $0xa0] sm:$0xff] }
   0x4   :  { %738 = vmatprep.subr.msk.bf16.mxu0 %vm83_vm0, %v58_v2  ;;  %v51_v13 = vpack.c.bf16 %v21_v11, %v20_v10  ;;  %v39_v15 = vld [vmem:[%s1052_s0 + $0xa8] sm:$0xff]  ;;  %v22_v18 = vld [vmem:[%s1052_s0 + $0x20] sm:$0xff]  ;;  %v40_v22 = vld [vmem:[%s1052_s0 + $0xb0] sm:$0xff] }
   0x5   :  { %v88_v12 = vsel %vm83_vm0, %v50_v7, 0  ;;  %v60_v17 = vpack.c.bf16 %v39_v15, %v38_v14  ;;  %v23_v19 = vld [vmem:[%s1052_s0 + $0x28] sm:$0xff]  ;;  %v66_v20 = vld [vmem:[%s1054_s2] sm:$0xff]  ;;  %v41_v25 = vld [vmem:[%s1052_s0 + $0xb8] sm:$0xff] }
   0x6   :  { %721 = vmatpush3.bf16.xpose.msra.mxu0 %v88_v12  ;;  %v91_v16 = vsel %vm83_vm0, %v51_v13, 0  ;;  %v885_v21 = vld [vmem:[%s1053_s1] sm:$0x1f]   ;;  %70 = vperm.xlu0 %749, %v66_v20   ;;  %v67_v23 = vld [vmem:[%s1054_s2 + $0x8] sm:$0x3]  ;;  %v52_v24 = vpack.c.bf16 %v23_v19, %v22_v18  ;;  %v61_v28 = vpack.c.bf16 %v41_v25, %v40_v22  ;;  %v24_v29 = vld [vmem:[%s1052_s0 + $0x30] sm:$0xff] }
   0x7   :  { %739 = vmatprep.subr.msk.bf16.mxu0 %vm83_vm0, %v59_v9  ;;  %736 = vmatprep.mubr.msk.bf16.mxu0 %vm83_vm0, %v885_v21  ;;  %v688_v26 = vld [vmem:[%s1054_s2 + $0x20] sm:$0xff]  ;;  %v25_v30 = vld [vmem:[%s1052_s0 + $0x38] sm:$0xff]  ;;  %v695_v31 = vld [vmem:[%s1054_s2 + $0x30] sm:$0xff] }
   0x8   :  { %v94_v27 = vsel %vm83_vm0, %v52_v24, 0  ;;  %v53_v32 = vpack.c.bf16 %v25_v30, %v24_v29  ;;  %v42_v33 = vld [vmem:[%s1052_s0 + $0xc0] sm:$0xff]  ;;  %v43_v34 = vld [vmem:[%s1052_s0 + $0xc8] sm:$0xff]  ;;  %v709_v40 = vld [vmem:[%s1054_s2 + $0x50] sm:$0xff] }
   0x9   :  { %v702_v35 = vld [vmem:[%s1054_s2 + $0x40] sm:$0xff]  ;;  %v62_v37 = vpack.c.bf16 %v43_v34, %v42_v33  ;;  %v27_v39 = vld [vmem:[%s1052_s0 + $0x48] sm:$0xff]  ;;  %v44_v42 = vld [vmem:[%s1052_s0 + $0xd0] sm:$0xff] }
   0xa   :  { %75 = vperm.xlu0 %749, %v67_v23   ;;  %v97_v36 = vsel %vm83_vm0, %v53_v32, 0  ;;  %v26_v38 = vld [vmem:[%s1052_s0 + $0x40] sm:$0xff]  ;;  %v45_v43 = vld [vmem:[%s1052_s0 + $0xd8] sm:$0xff]  ;;  %v28_v47 = vld [vmem:[%s1052_s0 + $0x50] sm:$0xff] }
   0xb   :  { %v54_v41 = vpack.c.bf16 %v27_v39, %v26_v38  ;;  %v715_v44 = vld [vmem:[%s1054_s2 + $0x60] sm:$0xff]  ;;  %v63_v46 = vpack.c.bf16 %v45_v43, %v44_v42  ;;  %v29_v48 = vld [vmem:[%s1052_s0 + $0x58] sm:$0xff]  ;;  %v47_v51 = vld [vmem:[%s1052_s0 + $0xe8] sm:$0xff] }
   0xc   :  { %v55_v49 = vpack.c.bf16 %v29_v48, %v28_v47  ;;  %v46_v50 = vld [vmem:[%s1052_s0 + $0xe0] sm:$0xff]  ;;  %v31_v55 = vld [vmem:[%s1052_s0 + $0x68] sm:$0xff]  ;;  %v48_v57 = vld [vmem:[%s1052_s0 + $0xf0] sm:$0xff] }
   0xd   :  { %v100_v45 = vsel %vm83_vm0, %v54_v41, 0  ;;  %v64_v53 = vpack.c.bf16 %v47_v51, %v46_v50  ;;  %v30_v54 = vld [vmem:[%s1052_s0 + $0x60] sm:$0xff]  ;;  %v49_v58 = vld [vmem:[%s1052_s0 + $0xf8] sm:$0xff]  ;;  %v32_v61 = vld [vmem:[%s1052_s0 + $0x70] sm:$0xff] }
   0xe   :  { %723 = vmatpush3.bf16.xpose.msra.mxu0 %v91_v16  ;;  %269 = vperm.xlu0 %749, %v688_v26   ;;  %v103_v52 = vsel %vm83_vm0, %v55_v49, 0  ;;  %v56_v56 = vpack.c.bf16 %v31_v55, %v30_v54  ;;  %v65_v60 = vpack.c.bf16 %v49_v58, %v48_v57  ;;  %v33_v62 = vld [vmem:[%s1052_s0 + $0x78] sm:$0xff]  ;;  %v681_v1 = vld [vmem:[%s1054_s2 + $0x10] sm:$0xff]  ;;  %v689_v3 = vld [vmem:[%s1054_s2 + $0x28] sm:$0x3] }
   0xf   :  { %740 = vmatprep.subr.msk.bf16.mxu0 %vm83_vm0, %v60_v17  ;;  %v57_v63 = vpack.c.bf16 %v33_v62, %v32_v61  ;;  %190 = vperm.xlu1 %750, %v681_v1   ;;  %v682_v2 = vld [vmem:[%s1054_s2 + $0x18] sm:$0x3]  ;;  %v703_v5 = vld [vmem:[%s1054_s2 + $0x48] sm:$0x3]  ;;  %v753_v39 = vld [vmem:[%s1053_s1 + $0x10] sm:$0x1f]  }
  0x10   :  { %v106_v59 = vsel %vm83_vm0, %v56_v56, 0  ;;  %v696_v4 = vld [vmem:[%s1054_s2 + $0x38] sm:$0x3]  ;;  %v752_v23 = vld [vmem:[%s1053_s1 + $0x8] sm:$0x1f]  }
  0x11   :  { %v109_v0 = vsel %vm83_vm0, %v57_v63, 0  ;;  %v710_v7 = vld [vmem:[%s1054_s2 + $0x58] sm:$0x3] }
  0x12   :  { %346 = vperm.xlu0 %749, %v695_v31   ;;  %v754_v55 = vld [vmem:[%s1053_s1 + $0x18] sm:$0x1f]  }
  0x13   :  { %195 = vperm.xlu1 %750, %v682_v2  }
  0x16   :  { %725 = vmatpush3.bf16.xpose.msra.mxu0 %v94_v27  ;;  %423 = vperm.xlu0 %749, %v702_v35  }
  0x17   :  { %741 = vmatprep.subr.msk.bf16.mxu0 %vm83_vm0, %v61_v28  ;;  %274 = vperm.xlu1 %750, %v689_v3  }
  0x1a   :  { %500 = vperm.xlu0 %749, %v709_v40  }
  0x1b   :  { %351 = vperm.xlu1 %750, %v696_v4  }
  0x1e   :  { %727 = vmatpush3.bf16.xpose.msra.mxu0 %v97_v36  ;;  %575 = vperm.xlu0 %749, %v715_v44  }
  0x1f   :  { %742 = vmatprep.subr.msk.bf16.mxu0 %vm83_vm0, %v62_v37  ;;  %428 = vperm.xlu1 %750, %v703_v5  }
  0x23   :  { %505 = vperm.xlu1 %750, %v710_v7  }
  0x26   :  { %729 = vmatpush3.bf16.xpose.msra.mxu0 %v100_v45 }
  0x27   :  { %743 = vmatprep.subr.msk.bf16.mxu0 %vm83_vm0, %v63_v46 }
  0x2e   :  { %731 = vmatpush3.bf16.xpose.msra.mxu0 %v103_v52 }
  0x2f   :  { %744 = vmatprep.subr.msk.bf16.mxu0 %vm83_vm0, %v64_v53 }
  0x36   :  { %733 = vmatpush3.bf16.xpose.msra.mxu0 %v106_v59 }
  0x37   :  { %745 = vmatprep.subr.msk.bf16.mxu0 %vm83_vm0, %v65_v60 }
  0x3e   :  { %735 = vmatpush3.bf16.xpose.msra.mxu0 %v109_v0 }
  0x45   :  { %737 = vmatmul.mubr.msk.bf16.vlgmr.msra.gmra.mrb[0].mxu0 %vm83_vm0, %v885_v21 }
  0x85   :  { %v71_v8 = vpop.permute.xlu0 %70 }
  0x89   :  { %v76_v11 = vpop.permute.xlu0 %75 }
  0x8d   :  { %v270_v41 = vpop.permute.xlu0 %269 }
  0x8e   :  { %v191_v24 = vpop.permute.xlu1 %190 }
  0x91   :  { %v347_v57 = vpop.permute.xlu0 %346 }
  0x92   :  { %v196_v27 = vpop.permute.xlu1 %195 }
  0x96   :  { %v275_v43 = vpop.permute.xlu1 %274 }
  0x9a   :  { %v352_v59 = vpop.permute.xlu1 %351 }
 0x118   :  { %v169_v9 = vpop.f32.mrb[0].mxu0 }
 0x119   :  { %v171_v10 = vpop.f32.mrb[1].mxu0  ;;  %v170_v13 = vadd.f32 %v169_v9, %v71_v8 }
 0x11a   :  { %v173_v12 = vpop.f32.mrb[2].mxu0  ;;  %v172_v16 = vadd.f32 %v171_v10, %v71_v8  ;;  %v755_v8 = vld [vmem:[%s1053_s1 + $0x20] sm:$0x1f]   ;;  %v424_v10 = vpop.permute.xlu0 %423 }
 0x11b   :  { %v174_v14 = vadd.f32 %v173_v12, %v76_v11  ;;  %v175_v15 = vpop.f32.mrb[3].mxu0  ;;  %v429_v12 = vpop.permute.xlu1 %428 }
 0x11c   :  { %v176_v17 = vadd.f32 %v175_v15, %v76_v11 }
 0x11d   :  { %v178_v18 = vpack.c.bf16 %v174_v14, %v170_v13 }
 0x11e   :  { %v179_v19 = vpack.c.bf16 %v176_v17, %v172_v16 }
 0x11f   :  { %757 = vtanh.bf16 %v178_v18 }
 0x120   :  { %759 = vtanh.bf16 %v179_v19 }
 0x12a   :  { %v758_v20 = vpop.eup %757 }
 0x12b   :  { %v760_v21 = vpop.eup %759  ;;  %v209_v22 = vsel %vm207_vm1, %v758_v20, 0 }
 0x12c   :  { %684 = vmatprep.subr.msk.bf16.mxu1 %vm207_vm1, %v760_v21 }
 0x12d   :  { %215 = vmatpush1.bf16.msra.mxu1 %v209_v22 }
 0x130   :  { %685 = vmatmul.mubr.msk.bf16.vlgmr.msra.gmra.mrb[0].mxu1 %vm203_vm2, %v752_v23 }
 0x131   :  { %323 = vmatprep.mubr.bf16.mxu1 %v813_v6 }
 0x203   :  { %v248_v25 = vpop.f32.mrb[0].mxu1 }
 0x204   :  { %v250_v26 = vpop.f32.mrb[1].mxu1  ;;  %v249_v29 = vadd.f32 %v248_v25, %v191_v24 }
 0x205   :  { %v252_v28 = vpop.f32.mrb[2].mxu1  ;;  %v251_v32 = vadd.f32 %v250_v26, %v191_v24  ;;  %v756_v24 = vld [vmem:[%s1053_s1 + $0x28] sm:$0x1f]   ;;  %v501_v26 = vpop.permute.xlu0 %500 }
 0x206   :  { %v253_v30 = vadd.f32 %v252_v28, %v196_v27  ;;  %v254_v31 = vpop.f32.mrb[3].mxu1  ;;  %v506_v28 = vpop.permute.xlu1 %505 }
 0x207   :  { %v255_v33 = vadd.f32 %v254_v31, %v196_v27 }
 0x208   :  { %v257_v34 = vpack.c.bf16 %v253_v30, %v249_v29 }
 0x209   :  { %v258_v35 = vpack.c.bf16 %v255_v33, %v251_v32 }
 0x20a   :  { %761 = vtanh.bf16 %v257_v34 }
 0x20b   :  { %763 = vtanh.bf16 %v258_v35 }
 0x215   :  { %v762_v36 = vpop.eup %761 }
 0x216   :  { %v764_v37 = vpop.eup %763  ;;  %v286_v38 = vsel %vm207_vm1, %v762_v36, 0 }
 0x217   :  { %691 = vmatprep.subr.msk.bf16.mxu1 %vm207_vm1, %v764_v37 }
 0x218   :  { %292 = vmatpush1.bf16.msra.mxu1 %v286_v38 }
 0x21b   :  { %692 = vmatmul.mubr.msk.bf16.vlgmr.msra.gmra.mrb[4].mxu1 %vm203_vm2, %v753_v39 }
 0x21c   :  { %400 = vmatprep.mubr.bf16.mxu1 %v813_v6 }
 0x2ee   :  { %v325_v40 = vpop.f32.mrb[4].mxu1 }
 0x2ef   :  { %v327_v42 = vpop.f32.mrb[5].mxu1  ;;  %v326_v45 = vadd.f32 %v325_v40, %v270_v41  ;;  %v576_v40 = vpop.permute.xlu0 %575 }
 0x2f0   :  { %v329_v44 = vpop.f32.mrb[6].mxu1  ;;  %v328_v48 = vadd.f32 %v327_v42, %v270_v41 }
 0x2f1   :  { %v330_v46 = vadd.f32 %v329_v44, %v275_v43  ;;  %v331_v47 = vpop.f32.mrb[7].mxu1 }
 0x2f2   :  { %v332_v49 = vadd.f32 %v331_v47, %v275_v43 }
 0x2f3   :  { %v334_v50 = vpack.c.bf16 %v330_v46, %v326_v45 }
 0x2f4   :  { %v335_v51 = vpack.c.bf16 %v332_v49, %v328_v48 }
 0x2f5   :  { %765 = vtanh.bf16 %v334_v50 }
 0x2f6   :  { %767 = vtanh.bf16 %v335_v51 }
 0x300   :  { %v766_v52 = vpop.eup %765 }
 0x301   :  { %v768_v53 = vpop.eup %767  ;;  %v363_v54 = vsel %vm207_vm1, %v766_v52, 0 }
 0x302   :  { %698 = vmatprep.subr.msk.bf16.mxu1 %vm207_vm1, %v768_v53  ;;  %v814_v53 = vmov 1966171168  }
 0x303   :  { %369 = vmatpush1.bf16.msra.mxu1 %v363_v54  ;;  %v644_v54 = vunpack.c.l.s4 %v814_v53 }
 0x306   :  { %699 = vmatmul.mubr.msk.bf16.vlgmr.msra.gmra.mrb[8].mxu1 %vm203_vm2, %v754_v55  ;;  %v646_v55 = vlaneseq }
 0x307   :  { %477 = vmatprep.mubr.bf16.mxu1 %v813_v6 }
 0x308   :  { %vm660_vm3 = vcmp.lt.s32.totalorder %v646_v55, 256 }
 0x3d9   :  { %v402_v56 = vpop.f32.mrb[8].mxu1 }
 0x3da   :  { %v404_v58 = vpop.f32.mrb[9].mxu1  ;;  %v403_v61 = vadd.f32 %v402_v56, %v347_v57  ;;  %v645_v56 = vunpack.c.0.s8 %v644_v54 }
 0x3db   :  { %v406_v60 = vpop.f32.mrb[10].mxu1  ;;  %v405_v0 = vadd.f32 %v404_v58, %v347_v57  ;;  %v647_v57 = vshrl.u32 %v646_v55, 7 }
 0x3dc   :  { %v407_v62 = vadd.f32 %v406_v60, %v352_v59  ;;  %v408_v63 = vpop.f32.mrb[11].mxu1 }
 0x3dd   :  { %v409_v1 = vadd.f32 %v408_v63, %v352_v59  ;;  %v648_v59 = vsub.s32 %v645_v56, %v647_v57 }
 0x3de   :  { %v411_v2 = vpack.c.bf16 %v407_v62, %v403_v61 }
 0x3df   :  { %v412_v3 = vpack.c.bf16 %v409_v1, %v405_v0 }
 0x3e0   :  { %769 = vtanh.bf16 %v411_v2 }
 0x3e1   :  { %771 = vtanh.bf16 %v412_v3 }
 0x3eb   :  { %v770_v4 = vpop.eup %769 }
 0x3ec   :  { %v772_v5 = vpop.eup %771  ;;  %v440_v7 = vsel %vm207_vm1, %v770_v4, 0 }
 0x3ed   :  { %705 = vmatprep.subr.msk.bf16.mxu1 %vm207_vm1, %v772_v5 }
 0x3ee   :  { %446 = vmatpush1.bf16.msra.mxu1 %v440_v7 }
 0x3f1   :  { %706 = vmatmul.mubr.msk.bf16.vlgmr.msra.gmra.mrb[12].mxu1 %vm203_vm2, %v755_v8 }
 0x3f2   :  { %554 = vmatprep.mubr.bf16.mxu1 %v813_v6 }
 0x4c4   :  { %v479_v9 = vpop.f32.mrb[12].mxu1 }
 0x4c5   :  { %v481_v11 = vpop.f32.mrb[13].mxu1  ;;  %v480_v14 = vadd.f32 %v479_v9, %v424_v10 }
 0x4c6   :  { %v483_v13 = vpop.f32.mrb[14].mxu1  ;;  %v482_v17 = vadd.f32 %v481_v11, %v424_v10 }
 0x4c7   :  { %v484_v15 = vadd.f32 %v483_v13, %v429_v12  ;;  %v485_v16 = vpop.f32.mrb[15].mxu1 }
 0x4c8   :  { %v486_v18 = vadd.f32 %v485_v16, %v429_v12 }
 0x4c9   :  { %v488_v19 = vpack.c.bf16 %v484_v15, %v480_v14 }
 0x4ca   :  { %v489_v20 = vpack.c.bf16 %v486_v18, %v482_v17 }
 0x4cb   :  { %773 = vtanh.bf16 %v488_v19 }
 0x4cc   :  { %775 = vtanh.bf16 %v489_v20 }
 0x4d6   :  { %v774_v21 = vpop.eup %773 }
 0x4d7   :  { %v776_v22 = vpop.eup %775  ;;  %v517_v23 = vsel %vm207_vm1, %v774_v21, 0 }
 0x4d8   :  { %712 = vmatprep.subr.msk.bf16.mxu1 %vm207_vm1, %v776_v22 }
 0x4d9   :  { %523 = vmatpush1.bf16.msra.mxu1 %v517_v23 }
 0x4dc   :  { %713 = vmatmul.mubr.msk.bf16.vlgmr.msra.gmra.mrb[16].mxu1 %vm203_vm2, %v756_v24 }
 0x4dd   :  { %619 = vmatprep.mubr.bf16.mxu1 %v813_v6  ;;  %v714_v6 = vld [vmem:[%s1053_s1 + $0x30] sm:$0xf] }
 0x5af   :  { %v556_v25 = vpop.f32.mrb[16].mxu1 }
 0x5b0   :  { %v558_v27 = vpop.f32.mrb[17].mxu1  ;;  %v557_v30 = vadd.f32 %v556_v25, %v501_v26 }
 0x5b1   :  { %v560_v29 = vpop.f32.mrb[18].mxu1  ;;  %v559_v33 = vadd.f32 %v558_v27, %v501_v26 }
 0x5b2   :  { %v561_v31 = vadd.f32 %v560_v29, %v506_v28  ;;  %v562_v32 = vpop.f32.mrb[19].mxu1 }
 0x5b3   :  { %v563_v34 = vadd.f32 %v562_v32, %v506_v28 }
 0x5b4   :  { %v565_v35 = vpack.c.bf16 %v561_v31, %v557_v30 }
 0x5b5   :  { %v566_v36 = vpack.c.bf16 %v563_v34, %v559_v33 }
 0x5b6   :  { %777 = vtanh.bf16 %v565_v35 }
 0x5b7   :  { %779 = vtanh.bf16 %v566_v36 }
 0x5c1   :  { %v778_v37 = vpop.eup %777 }
 0x5c2   :  { %v780_v38 = vpop.eup %779  ;;  %v582_v39 = vsel %vm207_vm1, %v778_v37, 0 }
 0x5c3   :  { %716 = vmatprep.subr.msk.bf16.mxu1 %vm207_vm1, %v780_v38 }
 0x5c4   :  { %588 = vmatpush1.bf16.msra.mxu1 %v582_v39 }
 0x5c7   :  { %717 = vmatmul.mubr.msk.bf16.vlgmr.msra.gmra.mrb[20].mxu1 %vm203_vm2, %v714_v6 }
 0x69a   :  { %v621_v41 = vpop.f32.mrb[20].mxu1 }
 0x69b   :  { %v622_v42 = vadd.f32 %v621_v41, %v576_v40  ;;  %v623_v43 = vpop.f32.mrb[21].mxu1 }
 0x69c   :  { %v624_v44 = vadd.f32 %v623_v43, %v576_v40  ;;  %v625_v45 = vpop.f32.mrb[22].mxu1 }
 0x69d   :  { %v718_v46 = vmul.f32 -1.442695, %v622_v42  ;;  %v626_v47 = vpop.f32.mrb[23].mxu1 }
 0x69e   :  { %v719_v48 = vmul.f32 -1.442695, %v624_v44 }
 0x69f   :  { %781 = vpow2.f32 %v718_v46 }
 0x6a0   :  { %783 = vpow2.f32 %v719_v48 }
 0x6a9   :  { %v782_v49 = vpop.eup %781 }
 0x6aa   :  { %v784_v50 = vpop.eup %783  ;;  %v634_v51 = vadd.f32 1.0, %v782_v49 }
 0x6ab   :  { %v635_v52 = vadd.f32 1.0, %v784_v50 }
 0x6ac   :  { %785 = vrcp.f32 %v634_v51 }
 0x6ad   :  { %787 = vrcp.f32 %v635_v52 }
 0x6b6   :  { %v786_v58 = vpop.eup %785 }
 0x6b7   :  { %v788_v60 = vpop.eup %787 }
 0x6b8   :  { %v642_v61 = vcombine.low %v786_v58, %v788_v60 }
 0x6ba   :  { %v649_v62 = vrot.slane %v642_v61, %v648_v59 }
 0x6bc   :  { %v656_v63 = vrot.slane %v649_v62, %v648_v59 }
 0x6be   :  { %662 = vst.msk [vmem:[#allocation2] sm:$0x3] %vm660_vm3, %v656_v63 }
 0x6bf   :  { %667 = vsyncadd [#allocation3], 16  ;;  %s815_s1 = smov [#allocation2]  }
 0x6c0   :  { %s669_s6 = sshll.u32 %s815_s1, 4  ;;  %s670_s6 = int_to_ptr.vmem [resolvable:$true] %s669_s6 }
 0x6c1   :  { %s789_s7 = scalar_lea.vmem %s670_s6, 16  ;;  %s793_s8 = scalar_lea.vmem %s670_s6, 32 }
 0x6c2   :  { %p790_p0 = scmp.ne.s32.totalorder %s670_s6, %s789_s7  ;;  %p794_p1 = scmp.lt.s32.totalorder %s670_s6, %s670_s6 }
 0x6c3   :  { %p795_p2 = scmp.lt.s32.totalorder %s793_s8, %s789_s7 }
 0x6c5   :  { %p796_p3 = por %p795_p2, %p794_p1 }
 0x6c7   :  { %p797_p4 = pnand %p796_p3, %p790_p0 }
 0x6c9   :  { %800 = shalt.err (!%p797_p4)
}
 0x6ca   :  { %s801_s11 = scalar_lea.hbm %s1055_s3, 16 }
 0x6cb   :  { %p802_p5 = scmp.ne.s32.totalorder %s1055_s3, %s801_s11  ;;  %p805_p6 = scmp.lt.u32.totalorder %s801_s11, %s1055_s3 }
 0x6cd   :  { %p807_p7 = pnand %p805_p6, %p802_p5 }
 0x6cf   :  { %810 = shalt.err (!%p807_p7)
}
 0x6d0   :  { %672 = dma.vmem_to_hbm [thread:$0]  %s670_s6, 16, %s1055_s3, [#allocation3]  }
 0x6d1   :  { %811 = dma.done.wait [#allocation3], 32  }
 0x6d2   :  { %812 = vsyncadd [#allocation3], 4294967264 }
 0x6d3   :  { %676 = vsyncpa [#allocation3], 1 }

</bundles_post_ra>
